<compile_context>
chip_gen: v7x
topology: tpu7x:2x2x1
jax: 0.10.0
libtpu: 0.0.40
codegen_flags: <defaults>
</compile_context>

<pallas_src>
import functools
import math

import jax
import jax.numpy as jnp
from jax.experimental import pallas as pl
from jax.experimental.pallas import tpu as pltpu


# ---------------------------------------------------------------------------
# tiling helpers
# ---------------------------------------------------------------------------

_VMEM_LIMIT = 32 * 1024 * 1024          # scoped cap valid on v5e/v6e, within v7x's 64 MiB
_ATTN_VMEM_BUDGET = 12 * 1024 * 1024    # per-step working set target (double-buffered)


def _pick_tile(n: int, preferred: int, *, min_steps: int = 1) -> int:
    """Largest tile <= preferred that divides n and is (8,128)-legal.

    Returns either a multiple of 8 (256/128/8-aligned, largest alignment first, to feed
    the 256-wide MXU on v6e/v7x) or the full extent n (always legal).  min_steps>1 caps
    the tile so the grid has at least that many steps when divisibility allows.
    """
    if min_steps > 1:
        preferred = min(preferred, max(8, n // min_steps))
    if n <= preferred:
        return n
    for align in (256, 128, 8):
        if preferred < align:
            continue
        t = (preferred // align) * align
        while t >= align:
            if n % t == 0:
                return t
            t -= align
    return n


def _pick_q_tile(n: int, m: int, d: int, h: int, attn_bytes: int = 4,
                 budget: int = _ATTN_VMEM_BUDGET) -> int:
    """Query-row tile for the attention kernel, sized against a VMEM budget.

    Per grid step (double-buffered): q + o tiles (bf16), full-m K/V (bf16),
    per-head attention tiles (attn_bytes each).
    """
    def need(tq):
        return 2 * (2 * tq * d * 2 + m * 2 * d * 2 + h * tq * m * attn_bytes)

    tq = _pick_tile(n, 512)
    while tq > 8 and need(tq) > budget:
        nxt = _pick_tile(n, tq - 8)
        if nxt >= tq:
            break
        tq = nxt
    return tq


# ---------------------------------------------------------------------------
# 1) row-tiled linear:  y = x @ W^T + b   (W stored PyTorch-style [out, in], bf16)
# ---------------------------------------------------------------------------

def _linear_kernel(x_ref, w_ref, b_ref, o_ref):
    x = x_ref[...].astype(jnp.bfloat16)
    w = w_ref[...]                                   # already bf16
    # Contract the last dims of both operands -> no transpose of W, bf16 MXU, f32 accum.
    y = jax.lax.dot_general(
        x, w,
        dimension_numbers=(((1,), (1,)), ((), ())),
        preferred_element_type=jnp.float32,
    )
    y = y + b_ref[...].astype(jnp.float32)
    o_ref[...] = y.astype(o_ref.dtype)


def linear(x, w, b, *, out_dtype=jnp.bfloat16, tile_m: int = 512):
    M, d_in = x.shape
    d_out, d_in2 = w.shape
    assert d_in == d_in2
    tm = _pick_tile(M, tile_m, min_steps=2)
    w_bf = w.astype(jnp.bfloat16)
    b2 = b.reshape(1, d_out).astype(jnp.float32)

    flops = 2 * M * d_in * d_out
    bytes_accessed = (x.dtype.itemsize * M * d_in + 2 * d_out * d_in + 4 * d_out
                      + jnp.dtype(out_dtype).itemsize * M * d_out)

    return pl.pallas_call(
        _linear_kernel,
        out_shape=jax.ShapeDtypeStruct((M, d_out), out_dtype),
        grid_spec=pltpu.PrefetchScalarGridSpec(
            num_scalar_prefetch=0,
            grid=(M // tm,),
            in_specs=[
                pl.BlockSpec((tm, d_in), lambda i: (i, 0)),
                pl.BlockSpec((d_out, d_in), lambda i: (0, 0)),   # grid-invariant weight
                pl.BlockSpec((1, d_out), lambda i: (0, 0)),
            ],
            out_specs=pl.BlockSpec((tm, d_out), lambda i: (i, 0)),
        ),
        compiler_params=pltpu.CompilerParams(
            dimension_semantics=("parallel",),
            vmem_limit_bytes=_VMEM_LIMIT,
        ),
        cost_estimate=pl.CostEstimate(
            flops=flops, transcendentals=0, bytes_accessed=bytes_accessed),
    )(x, w_bf, b2)


# ---------------------------------------------------------------------------
# 2) fused multi-head 'dot' attention, heads handled INSIDE the kernel
#    q:  (b, n, d)  bf16      kv: (b, m, 2d) bf16  ([K | V] along last dim)
#    o:  (b, n, d)  bf16 (lane-dense, heads merged into last dim)
#    a:  (h, b, n, m) f32  -> reshape (free) to the module's (h*b, n, m)
# ---------------------------------------------------------------------------

def _attention_kernel(q_ref, kv_ref, o_ref, a_ref, *, num_heads, head_dim, d_model):
    q = q_ref[0]             # (TQ, d)  bf16
    kv = kv_ref[0]           # (M, 2d)  bf16

    o_parts = []
    for hh in range(num_heads):          # static unroll over heads
        lo = hh * head_dim
        q_h = q[:, lo:lo + head_dim]                              # (TQ, p)
        k_h = kv[:, lo:lo + head_dim]                             # (M, p)
        v_h = kv[:, d_model + lo:d_model + lo + head_dim]         # (M, p)

        # Un-scaled dot-product similarity ('dot'); contract the last dims of both
        # operands (no k.T), bf16 MXU with f32 accumulation.
        s = jax.lax.dot_general(
            q_h, k_h,
            dimension_numbers=(((1,), (1,)), ((), ())),
            preferred_element_type=jnp.float32,
        )                                                          # (TQ, M) f32

        # Numerically stable softmax over the key axis; EUP approx reciprocal keeps the
        # VALU free (one broadcast multiply instead of a full-tile divide).
        s_max = jnp.max(s, axis=-1, keepdims=True)
        e = jnp.exp(s - s_max)
        inv = pl.reciprocal(jnp.sum(e, axis=-1, keepdims=True), approx=True)
        attn = e * inv

        o_h = jax.lax.dot_general(
            attn.astype(v_h.dtype), v_h,
            dimension_numbers=(((1,), (0,)), ((), ())),
            preferred_element_type=jnp.float32,
        )                                                          # (TQ, p) f32

        o_parts.append(o_h.astype(o_ref.dtype))
        a_ref[hh, 0] = attn.astype(a_ref.dtype)

    # Single lane-dense store of the merged-head tile (last dim = d).
    o_ref[0] = jnp.concatenate(o_parts, axis=-1)


def fused_mh_attention(q, kv, num_heads, *, attn_dtype=jnp.float32):
    b, n, d = q.shape
    _, m, d2 = kv.shape
    assert d2 == 2 * d and d % num_heads == 0
    p = d // num_heads
    tq = _pick_q_tile(n, m, d, num_heads,
                      attn_bytes=jnp.dtype(attn_dtype).itemsize)

    kernel = functools.partial(_attention_kernel, num_heads=num_heads,
                               head_dim=p, d_model=d)

    flops = 4 * b * num_heads * n * m * p
    transcendentals = b * num_heads * n * m
    bytes_accessed = (2 * b * n * d + 2 * b * m * 2 * d + 2 * b * n * d
                      + jnp.dtype(attn_dtype).itemsize * num_heads * b * n * m)

    return pl.pallas_call(
        kernel,
        out_shape=(
            jax.ShapeDtypeStruct((b, n, d), q.dtype),
            jax.ShapeDtypeStruct((num_heads, b, n, m), attn_dtype),
        ),
        grid_spec=pltpu.PrefetchScalarGridSpec(
            num_scalar_prefetch=0,
            grid=(b, n // tq),
            in_specs=[
                pl.BlockSpec((1, tq, d), lambda bi, qi: (bi, qi, 0)),
                pl.BlockSpec((1, m, 2 * d), lambda bi, qi: (bi, 0, 0)),
            ],
            out_specs=[
                pl.BlockSpec((1, tq, d), lambda bi, qi: (bi, qi, 0)),
                pl.BlockSpec((num_heads, 1, tq, m), lambda bi, qi: (0, bi, qi, 0)),
            ],
        ),
        compiler_params=pltpu.CompilerParams(
            dimension_semantics=("parallel", "parallel"),
            vmem_limit_bytes=_VMEM_LIMIT,
        ),
        cost_estimate=pl.CostEstimate(
            flops=flops, transcendentals=transcendentals,
            bytes_accessed=bytes_accessed),
    )(q, kv)


# ---------------------------------------------------------------------------
# 3) fused post block:
#    O = o @ Wo^T + bo ; H = LN1(x + O) ; out = LN2(H + relu(H @ Wr^T + br))
# ---------------------------------------------------------------------------

def _layernorm(x, gamma, beta, eps=1e-5):
    mu = jnp.mean(x, axis=-1, keepdims=True)
    var = jnp.mean(jnp.square(x - mu), axis=-1, keepdims=True)
    return (x - mu) * jax.lax.rsqrt(var + eps) * gamma + beta


def _post_block_kernel(x_ref, o_ref, wo_ref, bo_ref, g1_ref, b1_ref,
                       wr_ref, br_ref, g2_ref, b2_ref, out_ref, *, use_ln):
    # fused output projection (bf16 MXU, f32 accumulation)
    oo = jax.lax.dot_general(
        o_ref[...], wo_ref[...],
        dimension_numbers=(((1,), (1,)), ((), ())),
        preferred_element_type=jnp.float32,
    )
    oo = oo + bo_ref[...].astype(jnp.float32)

    h1 = x_ref[...].astype(jnp.float32) + oo
    if use_ln:
        h1 = _layernorm(h1, g1_ref[...].astype(jnp.float32),
                        b1_ref[...].astype(jnp.float32))

    r = jax.lax.dot_general(
        h1.astype(jnp.bfloat16), wr_ref[...],
        dimension_numbers=(((1,), (1,)), ((), ())),
        preferred_element_type=jnp.float32,
    )
    r = jnp.maximum(r + br_ref[...].astype(jnp.float32), 0.0)

    out = h1 + r
    if use_ln:
        out = _layernorm(out, g2_ref[...].astype(jnp.float32),
                         b2_ref[...].astype(jnp.float32))
    out_ref[...] = out.astype(out_ref.dtype)


def post_block(x, o, wo, bo, g1, b1, wr, br, g2, b2, *, use_ln=True, tile_m: int = 512):
    M, d = x.shape
    tm = _pick_tile(M, tile_m, min_steps=2)
    kernel = functools.partial(_post_block_kernel, use_ln=use_ln)

    flops = 4 * M * d * d + 16 * M * d
    bytes_accessed = 4 * 2 * M * d + 2 * M * d + 2 * 2 * d * d + 6 * 4 * d

    return pl.pallas_call(
        kernel,
        out_shape=jax.ShapeDtypeStruct((M, d), x.dtype),
        grid_spec=pltpu.PrefetchScalarGridSpec(
            num_scalar_prefetch=0,
            grid=(M // tm,),
            in_specs=[
                pl.BlockSpec((tm, d), lambda i: (i, 0)),   # x (residual, f32)
                pl.BlockSpec((tm, d), lambda i: (i, 0)),   # o (attention out, bf16)
                pl.BlockSpec((d, d), lambda i: (0, 0)),    # Wo (bf16)
                pl.BlockSpec((1, d), lambda i: (0, 0)),    # bo
                pl.BlockSpec((1, d), lambda i: (0, 0)),    # LN1 gamma
                pl.BlockSpec((1, d), lambda i: (0, 0)),    # LN1 beta
                pl.BlockSpec((d, d), lambda i: (0, 0)),    # rFF weight (bf16)
                pl.BlockSpec((1, d), lambda i: (0, 0)),    # rFF bias
                pl.BlockSpec((1, d), lambda i: (0, 0)),    # LN2 gamma
                pl.BlockSpec((1, d), lambda i: (0, 0)),    # LN2 beta
            ],
            out_specs=pl.BlockSpec((tm, d), lambda i: (i, 0)),
        ),
        compiler_params=pltpu.CompilerParams(
            dimension_semantics=("parallel",),
            vmem_limit_bytes=_VMEM_LIMIT,
        ),
        cost_estimate=pl.CostEstimate(
            flops=flops, transcendentals=0, bytes_accessed=bytes_accessed),
    )(x, o, wo.astype(jnp.bfloat16), bo.reshape(1, d),
      g1.reshape(1, d), b1.reshape(1, d),
      wr.astype(jnp.bfloat16), br.reshape(1, d),
      g2.reshape(1, d), b2.reshape(1, d))


# ---------------------------------------------------------------------------
# full PoolingMultiheadCrossAttention forward
# ---------------------------------------------------------------------------

def pooling_multihead_cross_attention(params, X, Y, *, ln=True):
    """X: [b, n, d] (queries), Y: [b, m, d] (keys/values) -> (out [b,n,d], attn [h*b,n,m])."""
    b, n, d = X.shape
    _, m, _ = Y.shape
    h = params["num_heads"]
    assert d % h == 0

    Xf = X.reshape(b * n, d)
    Yf = Y.reshape(b * m, d)

    # fused K/V projection weights: single pallas_call reads Yf once
    w_kv = jnp.concatenate([params["wk"], params["wv"]], axis=0)
    b_kv = jnp.concatenate([params["bk"], params["bv"]], axis=0)

    q = linear(Xf, params["wq"], params["bq"], out_dtype=jnp.bfloat16)      # (b*n, d)
    kv = linear(Yf, w_kv, b_kv, out_dtype=jnp.bfloat16)                     # (b*m, 2d)

    o, attn = fused_mh_attention(q.reshape(b, n, d), kv.reshape(b, m, 2 * d), h)
    # o: (b, n, d) bf16, heads already merged ; attn: (h, b, n, m) f32

    out = post_block(Xf, o.reshape(b * n, d),
                     params["wo"], params["bo"],
                     params["ln1_g"], params["ln1_b"],
                     params["wr"], params["br"],
                     params["ln2_g"], params["ln2_b"],
                     use_ln=ln)
    return out.reshape(b, n, d), attn.reshape(h * b, n, m)


# ---------------------------------------------------------------------------
# pure-JAX reference (mirrors the kernel's bf16 matmul precision) + demo
# ---------------------------------------------------------------------------

def _reference(params, X, Y, *, ln=True, compute_dtype=jnp.bfloat16):
    b, n, d = X.shape
    _, m, _ = Y.shape
    h = params["num_heads"]
    p = d // h
    cdt = compute_dtype

    def lin(x, w, bia):
        y = jnp.dot(x.astype(cdt), w.astype(cdt).T,
                    preferred_element_type=jnp.float32)
        return y + bia

    q = lin(X.reshape(b * n, d), params["wq"], params["bq"]).astype(cdt)
    k = lin(Y.reshape(b * m, d), params["wk"], params["bk"]).astype(cdt)
    v = lin(Y.reshape(b * m, d), params["wv"], params["bv"]).astype(cdt)

    q = q.reshape(b, n, h, p).transpose(2, 0, 1, 3).reshape(h * b, n, p)
    k = k.reshape(b, m, h, p).transpose(2, 0, 1, 3).reshape(h * b, m, p)
    v = v.reshape(b, m, h, p).transpose(2, 0, 1, 3).reshape(h * b, m, p)

    scores = jnp.einsum("gqd,gkd->gqk", q, k, preferred_element_type=jnp.float32)
    attn = jax.nn.softmax(scores, axis=-1)
    o = jnp.einsum("gqk,gkd->gqd", attn.astype(cdt), v,
                   preferred_element_type=jnp.float32).astype(cdt)
    o = o.reshape(h, b, n, p).transpose(1, 2, 0, 3).reshape(b * n, d)
    o = lin(o, params["wo"], params["bo"])

    def ln_f(x, g, bb):
        mu = x.mean(-1, keepdims=True)
        var = ((x - mu) ** 2).mean(-1, keepdims=True)
        return (x - mu) / jnp.sqrt(var + 1e-5) * g + bb

    x_ = X.reshape(b * n, d)
    h1 = x_ + o
    if ln:
        h1 = ln_f(h1, params["ln1_g"], params["ln1_b"])
    r = jnp.maximum(
        jnp.dot(h1.astype(cdt), params["wr"].astype(cdt).T,
                preferred_element_type=jnp.float32) + params["br"], 0.0)
    out = h1 + r
    if ln:
        out = ln_f(out, params["ln2_g"], params["ln2_b"])
    return out.reshape(b, n, d), attn


def init_params(key, d, h):
    ks = jax.random.split(key, 10)

    def w(k):
        return jax.random.normal(k, (d, d), jnp.float32) / math.sqrt(d)

    def bias(k):
        return jax.random.uniform(k, (d,), jnp.float32, -0.1, 0.1)

    return dict(
        num_heads=h,
        wq=w(ks[0]), bq=bias(ks[1]),
        wk=w(ks[2]), bk=bias(ks[3]),
        wv=w(ks[4]), bv=bias(ks[5]),
        wo=w(ks[6]), bo=bias(ks[7]),
        wr=w(ks[8]), br=bias(ks[9]),
        ln1_g=jnp.ones((d,), jnp.float32), ln1_b=jnp.zeros((d,), jnp.float32),
        ln2_g=jnp.ones((d,), jnp.float32), ln2_b=jnp.zeros((d,), jnp.float32),
    )


if __name__ == "__main__":
    key = jax.random.PRNGKey(0)
    kx, ky, kp = jax.random.split(key, 3)

    b, n, m, d, h = 2, 8, 16, 32, 4   # batch, query-set, key-set, model dim, heads
    X = jax.random.normal(kx, (b, n, d), dtype=jnp.float32)
    Y = jax.random.normal(ky, (b, m, d), dtype=jnp.float32)
    params = init_params(kp, d, h)

    out, attn = pooling_multihead_cross_attention(params, X, Y, ln=True)
    out = jax.block_until_ready(out)
    attn = jax.block_until_ready(attn)

    ref_out, ref_attn = _reference(params, X, Y, ln=True)

    assert out.shape == (b, n, d)
    assert attn.shape == (h * b, n, m)
    # Tolerances account for bf16 MXU inputs + EUP approx reciprocal (reference mirrors
    # the same bf16 matmul precision, so the remaining difference is tiny).
    assert jnp.allclose(attn.astype(jnp.float32), ref_attn, atol=2e-2, rtol=2e-2), \
        "attn mismatch"
    assert jnp.allclose(out.astype(jnp.float32), ref_out, atol=2e-2, rtol=2e-2), \
        "output mismatch"

    print("KERNEL_OK")
</pallas_src>

<mosaic_0001>
module attributes {stable_mosaic.version = 11 : i64} {
  func.func @_linear_kernel(%arg0: i32, %arg1: memref<8x32xf32, #tpu.memory_space<vmem>>, %arg2: memref<32x32xbf16, #tpu.memory_space<vmem>>, %arg3: memref<1x32xf32, #tpu.memory_space<vmem>>, %arg4: memref<8x32xbf16, #tpu.memory_space<vmem>>) attributes {dimension_semantics = [#tpu.dimension_semantics<parallel>], iteration_bounds = array<i64: 2>, scalar_prefetch = 0 : i64, scratch_operands = 0 : i64, tpu.core_type = #tpu.core_type<tc>, window_params = [{transform_indices = @transform_0, window_bounds = array<i64: 8, 32>}, {pipeline_mode = #tpu.pipeline_mode<synchronous>, transform_indices = @transform_1, window_bounds = array<i64: 32, 32>}, {pipeline_mode = #tpu.pipeline_mode<synchronous>, transform_indices = @transform_2, window_bounds = array<i64: 1, 32>}, {transform_indices = @transform_3, window_bounds = array<i64: 8, 32>}]} {
    %c0 = arith.constant 0 : index
    %c0_0 = arith.constant 0 : index
    %0 = vector.load %arg1[%c0, %c0_0] : memref<8x32xf32, #tpu.memory_space<vmem>>, vector<8x32xf32>
    %1 = arith.truncf %0 : vector<8x32xf32> to vector<8x32xbf16>
    %c0_1 = arith.constant 0 : index
    %c0_2 = arith.constant 0 : index
    %2 = vector.load %arg2[%c0_1, %c0_2] : memref<32x32xbf16, #tpu.memory_space<vmem>>, vector<32x32xbf16>
    %cst = arith.constant dense<0.000000e+00> : vector<8x32xf32>
    %3 = tpu.matmul %1, %2, %cst {dimension_numbers = #tpu.dot_dimension_numbers<[1], [1], [0], [0], [0, 0, 1, 0], [], []>} : vector<8x32xbf16>, vector<32x32xbf16>, vector<8x32xf32> -> vector<8x32xf32>
    %c0_3 = arith.constant 0 : index
    %c0_4 = arith.constant 0 : index
    %4 = vector.load %arg3[%c0_3, %c0_4] : memref<1x32xf32, #tpu.memory_space<vmem>>, vector<1x32xf32>
    %5 = vector.broadcast %4 : vector<1x32xf32> to vector<8x32xf32>
    %6 = arith.addf %3, %5 : vector<8x32xf32>
    %7 = arith.truncf %6 : vector<8x32xf32> to vector<8x32xbf16>
    %c0_5 = arith.constant 0 : index
    %c0_6 = arith.constant 0 : index
    %8 = vector.load %arg4[%c0_5, %c0_6] : memref<8x32xbf16, #tpu.memory_space<vmem>>, vector<8x32xbf16>
    tpu.vector_store %arg4[%c0_5, %c0_6], %7 {strides = array<i32>} : memref<8x32xbf16, #tpu.memory_space<vmem>>, vector<8x32xbf16>,
    return
  }
  func.func @transform_0(%arg0: i32) -> (i32, i32) {
    %c0_i32 = arith.constant 0 : i32
    %c0_i32_0 = arith.constant 0 : i32
    return %arg0, %c0_i32 : i32, i32
  }
  func.func @transform_1(%arg0: i32) -> (i32, i32) {
    %c0_i32 = arith.constant 0 : i32
    %c0_i32_0 = arith.constant 0 : i32
    %c0_i32_1 = arith.constant 0 : i32
    return %c0_i32, %c0_i32_0 : i32, i32
  }
  func.func @transform_2(%arg0: i32) -> (i32, i32) {
    %c0_i32 = arith.constant 0 : i32
    %c0_i32_0 = arith.constant 0 : i32
    %c0_i32_1 = arith.constant 0 : i32
    return %c0_i32, %c0_i32_0 : i32, i32
  }
  func.func @transform_3(%arg0: i32) -> (i32, i32) {
    %c0_i32 = arith.constant 0 : i32
    %c0_i32_0 = arith.constant 0 : i32
    return %arg0, %c0_i32 : i32, i32
  }
}

</mosaic_0001>

<bundles_post_ra>
// kernel: tpu_custom_call.1
= control target key start
LH: loop header
LB: loop body
LE: loop exit
PB: predicated region body
PF: predicated region fallthrough
CT: control target
= control target key end

     0   :  { %8 = vsyncpa [#allocation3], 0  ;;  %s821_s0 = inlined_call_operand.hbm [shape: f32[16,32], index: 0, kind: input, shape index: {}]   ;;  %s822_s1 = inlined_call_operand.hbm [shape: bf16[32,32], index: 1, kind: input, shape index: {}]   ;;  %s823_s2 = inlined_call_operand.vmem [shape: f32[1,32], index: 2, kind: input, shape index: {}]   ;;  %s824_s3 = inlined_call_operand.hbm [shape: bf16[16,32], index: 3, kind: output, shape index: {}]  }
   0x1   :  { %10 = vsyncpa [#allocation3 + $0x1], 0 }
   0x2   :  { %11 = vsyncpa [#allocation6], 0 }
   0x3   :  { %12 = vsyncpa [#allocation4], 0 }
   0x4   :  { %14 = vsyncpa [#allocation4 + $0x1], 0  ;;  %s621_s12 = smov 0   ;;  %s623_s13 = smov 0  }
   0x5   :  { %s625_s14 = smov 0   ;;  %s627_s15 = smov 0  }
   0x6 LB: > { %s642_s16 = sadd.s32 4294967295, %s592_s15   ;;  %s372_s17 = sadd.s32 4294967294, %s592_s15   ;;  %s592_s15 = sphi %s627_s15, %s844_s15   ;;  %s588_s14 = sphi %s625_s14, %s843_s14   ;;  %s584_s13 = sphi %s623_s13, %s842_s13   ;;  %s580_s12 = sphi %s621_s12, %s841_s12  }
   0x7   : > { %p40_p0 = scmp.ne.s32.totalorder %s584_s13, %s580_s12  ;;  %p825_p1 = scmp.eq.s32.totalorder %s642_s16, 0 }
   0x8   : > { %p112_p3 = scmp.eq.s32.totalorder %s372_s17, 1  ;;  %p373_p5 = scmp.ge.s32.totalorder %s592_s15, 1 }
   0x9   : > { %p651_p4 = por %p825_p1, %p40_p0  ;;  %p119_p7 = scmp.lt.s32.totalorder %s592_s15, 3 }
   0xa   : > { %p656_p6 = por %p112_p3, %p40_p0  ;;  %s594_s21 = smov [#allocation5]  }
   0xb   : > { %s828_s18 = scalar_select %p651_p4, 1, 0 }
   0xc   : > { %s829_s19 = scalar_select %p656_p6, 1, 0 }
   0xd   : > { %p661_p8 = pnand %p373_p5, %p119_p7  ;;  %s131_s22 = sshll.u32 %s594_s21, 4  ;;  %s665_s22 = int_to_ptr.vmem [resolvable:$true] %s131_s22 }
   0xe   : > { %s677_s24 = sadd.s32 1, %s592_s15   ;;  %s27_s25 = sadd.s32 1, %s588_s14 }
   0xf   : > { %s830_s20 = scalar_select %p661_p8, 1, 0 }
  0x10   : > { %p409_p9 = pneg %p661_p8  ;;  %s24_s26 = ssub.s32 %s592_s15, %s677_s24 }
  0x11   : > { %s464_s29 = scalar_lea.hbm %s822_s1, 256 }
  0x12   : > { %p672_p11 = pnand %p409_p9, %p825_p1  ;;  %p465_p12 = scmp.ne.s32.totalorder %s822_s1, %s464_s29 }
  0x13   : > { %p471_p5 = scmp.lt.u32.totalorder %s464_s29, %s822_s1 }
  0x14   : > { %p466_p13 = pneg %p672_p11 }
  0x16   : > { %p467_p0 = pnand %p466_p13, %p465_p12 }
  0x18   : > { %p468_p3 = pneg %p467_p0 }
  0x1a   : > { %p473_p7 = pnand %p471_p5, %p468_p3 }
  0x1c   : > { %476 = shalt.err (!%p473_p7)
}
  0x1d   : > { %s477_s7 = scalar_lea.vmem %s665_s22, 256  ;;  %p485_p2 = scmp.lt.s32.totalorder %s665_s22, %s665_s22 }
  0x1e   : > { %p478_p9 = scmp.ne.s32.totalorder %s665_s22, %s477_s7  ;;  %p486_p6 = scmp.lt.s32.totalorder %s477_s7, %s477_s7 }
  0x20   : > { %p480_p10 = pnand %p478_p9, %p466_p13  ;;  %p487_p4 = por %p486_p6, %p485_p2 }
  0x22   : > { %p481_p1 = pneg %p480_p10 }
  0x24   : > { %p488_p8 = pnand %p487_p4, %p481_p1 }
  0x26   : > { %491 = shalt.err (!%p488_p8)
}
  0x27   : > { %s595_s8 = smov 64   ;;  %s596_s9 = smov 4  }
  0x28   : > { %412 = dma.hbm_to_vmem [thread:$0]  (!%p672_p11), %s822_s1, 256, %s665_s22, [#allocation6], %s595_s8, %s595_s8, %s596_s9  }
  0x29   : > { %p25_p2 = scmp.eq.s32.totalorder %s24_s26, 0  ;;  %p34_p1 = scmp.ne.s32.totalorder %s588_s14, %s584_s13 }
  0x2a   : > { %p35_p4 = scmp.eq.s32.totalorder %s592_s15, 0  ;;  %p422_p6 = scmp.lt.s32.totalorder %s592_s15, 2 }
  0x2b   : > { %s708_s17 = scalar_select %p25_p2, %s588_s14, %s27_s25  }
  0x2c   : > { %p36_p8 = por %p35_p4, %p34_p1  ;;  %p832_p10 = scmp.eq.s32.totalorder %s642_s16, 1 }
  0x2d   : > { %s148_s27 = sand.u32 1, %s588_s14   ;;  %s377_s28 = sshll.u32 %s592_s15, 7 }
  0x2e   : > { %p712_p12 = por %p832_p10, %p34_p1  ;;  %s376_s29 = sshll.u32 %s148_s27, 3 }
  0x2f   : > { %s721_s4 = scalar_lea.hbm %s821_s0, %s377_s28  ;;  %s152_s22 = scalar_lea.vmem [#allocation2], %s376_s29 }
  0x30   : > { %s159_s25 = sshll.u32 %s152_s22, 4  ;;  %p723_p11 = pnand %p422_p6, %p36_p8  ;;  %s727_s25 = int_to_ptr.vmem [resolvable:$true] %s159_s25 }
  0x31   : > { %s149_s5 = scalar_lea.sflag [#allocation3], %s148_s27  ;;  %s492_s6 = scalar_lea.hbm %s721_s4, 128 }
  0x32   : > { %p493_p13 = scmp.ne.s32.totalorder %s721_s4, %s492_s6  ;;  %p494_p0 = pneg %p723_p11 }
  0x33   : > { %s497_s9 = scalar_lea.hbm %s821_s0, 256  ;;  %p498_p7 = scmp.lt.u32.totalorder %s721_s4, %s821_s0 }
  0x34   : > { %p495_p3 = pnand %p494_p0, %p493_p13  ;;  %p499_p9 = scmp.lt.u32.totalorder %s497_s9, %s492_s6 }
  0x35   : > { %p501_p1 = scmp.lt.u32.totalorder %s492_s6, %s721_s4 }
  0x36   : > { %p496_p5 = pneg %p495_p3  ;;  %p500_p2 = por %p499_p9, %p498_p7 }
  0x38   : > { %p502_p4 = por %p501_p1, %p500_p2 }
  0x3a   : > { %p503_p6 = pnand %p502_p4, %p496_p5 }
  0x3c   : > { %506 = shalt.err (!%p503_p6)
}
  0x3d   : > { %s507_s27 = scalar_lea.vmem %s727_s25, 128  ;;  %s597_s28 = smov [#allocation2]  }
  0x3e   : > { %p508_p8 = scmp.ne.s32.totalorder %s727_s25, %s507_s27  ;;  %s512_s29 = sshll.u32 %s597_s28, 4  ;;  %s513_s29 = int_to_ptr.vmem [resolvable:$false] %s512_s29 }
  0x3f   : > { %s514_s23 = scalar_lea.vmem %s513_s29, 256  ;;  %p515_p3 = scmp.lt.s32.totalorder %s727_s25, %s513_s29 }
  0x40   : > { %p510_p10 = pnand %p508_p8, %p494_p0  ;;  %p516_p7 = scmp.lt.s32.totalorder %s514_s23, %s507_s27 }
  0x42   : > { %p511_p13 = pneg %p510_p10  ;;  %p517_p9 = por %p516_p7, %p515_p3 }
  0x44   : > { %p518_p2 = pnand %p517_p9, %p511_p13 }
  0x46   : > { %521 = shalt.err (!%p518_p2)
}
  0x47   : > { %416 = dma.hbm_to_vmem [thread:$0]  (!%p723_p11), %s721_s4, 128, %s727_s25, %s149_s5  }
  0x48   : > { %p835_p5 = scmp.ne.s32.totalorder %s830_s20, 0 }
  0x49   : > { %s757_s30 = sand.u32 (!%p835_p5), 1, %s584_s13   ;;  %p836_p0 = scmp.ne.s32.totalorder (!%p835_p5), %s828_s18, 0 }
  0x4a   : > { %168 = sbr.rel (%p835_p5) target bundleno = 332 (0x14c), region = 32  ;;  %s379_s22 = sshll.u32 (!%p835_p5), %s757_s30, 3 }
  0x4b   : > { %s171_s6 = scalar_lea.sflag (!%p835_p5), [#allocation3], %s757_s30  ;;  %s174_s7 = scalar_lea.vmem (!%p835_p5), [#allocation2], %s379_s22 }
  0x51   : > { %567 = dma.done.wait (%p836_p0), %s171_s6, 128  }
  0x52   : > { %569 = vsyncadd (%p836_p0), %s171_s6, 4294967168  ;;  %p837_p1 = scmp.eq.s32.totalorder %s642_s16, 0 }
  0x54   : > { %571 = dma.done.wait (%p837_p1), [#allocation6], 256   ;;  %p838_p11 = pmov %p837_p1 }
  0x55   : > { %v598_v0 = vmov 0.0   ;;  %vm599_vm0 = vmmov 0   ;;  %vm225_vm1 = vcmask 261120   ;;  %v462_v1 = vld [vmem:[#allocation5] sm:$0xff]   ;;  %v463_v3 = vld [vmem:[#allocation5 + $0x8] sm:$0xff]   ;;  %v202_v5 = vld [vmem:[%s174_s7] sm:$0xff] }
  0x56   : > { %573 = vsyncadd (%p838_p11), [#allocation6], 4294967040  ;;  %393 = vmatprep.subr.bf16.mxu0 %v598_v0  ;;  %397 = vmatprep.mubr.msk.bf16.mxu0 %vm599_vm0, %v598_v0  ;;  %v230_v2 = vsel %vm225_vm1, %v462_v1, 0  ;;  %v233_v4 = vsel %vm225_vm1, %v463_v3, 0  ;;  %v203_v6 = vpack.c.bf16 %v202_v5, %v202_v5  ;;  %s381_s18 = sshll.u32 %s757_s30, 2  ;;  %s387_s25 = sshll.u32 %s642_s16, 6 }
  0x57   : > { %394 = vmatpush3.bf16.xpose.msra.mxu0 %v230_v2  ;;  %v382_v7 = vld [vmem:[%s823_s2] ss:$0 sm:$0xff]  ;;  %s200_s26 = scalar_lea.vmem [#allocation7], %s381_s18  ;;  %vm276_vm2 = vcmask 257024   ;;  %s777_s10 = scalar_lea.hbm %s824_s3, %s387_s25 }
  0x58   : > { %395 = vmatprep.subr.bf16.mxu0 %v598_v0  ;;  %s292_s5 = sshll.u32 %s200_s26, 4  ;;  %s279_s16 = scalar_lea.sflag [#allocation4], %s757_s30  ;;  %s779_s5 = int_to_ptr.vmem [resolvable:$true] %s292_s5 }
  0x59   : > { %s522_s11 = scalar_lea.vmem %s779_s5, 64  ;;  %s600_s27 = smov [#allocation7]  }
  0x5a   : > { %p523_p4 = scmp.ne.s32.totalorder %s779_s5, %s522_s11  ;;  %s526_s28 = sshll.u32 %s600_s27, 4  ;;  %s527_s28 = int_to_ptr.vmem [resolvable:$false] %s526_s28 }
  0x5b   : > { %s528_s29 = scalar_lea.vmem %s527_s28, 128  ;;  %p529_p10 = scmp.lt.s32.totalorder %s779_s5, %s527_s28 }
  0x5c   : > { %p524_p6 = pnand %p523_p4, %p712_p12  ;;  %p530_p13 = scmp.lt.s32.totalorder %s528_s29, %s522_s11 }
  0x5e   : > { %p525_p8 = pneg %p524_p6  ;;  %p531_p3 = por %p530_p13, %p529_p10 }
  0x5f   : > { %396 = vmatpush3.bf16.xpose.msra.mxu0 %v233_v4 }
  0x60   : > { %p532_p7 = pnand %p531_p3, %p525_p8 }
  0x66   : > { %398 = vmatmul.mubr.msk.bf16.vlgmr.msra.gmra.mrb[0].mxu0 %vm225_vm1, %v203_v6 }
 0x139   : > { %v269_v8 = vpop.f32.mrb[0].mxu0 }
 0x13a   : > { %v270_v9 = vadd.f32 %v382_v7, %v269_v8  ;;  %v399_v10 = vpop.f32.mrb[1].mxu0 }
 0x13b   : > { %v272_v11 = vpop.f32.mrb[2].mxu0 }
 0x13c   : > { %v275_v12 = vpack.c.bf16 %v270_v9, %v270_v9  ;;  %v400_v13 = vpop.f32.mrb[3].mxu0 }
 0x13e   : > { %277 = vst.msk [vmem:[%s200_s26] sm:$0xf] %vm276_vm2, %v275_v12 }
 0x13f   : > { %535 = shalt.err (!%p532_p7)
}
 0x140   : > { %s536_s23 = scalar_lea.hbm %s777_s10, 64  ;;  %s540_s6 = scalar_lea.hbm %s824_s3, 128 }
 0x141   : > { %p537_p9 = scmp.ne.s32.totalorder %s777_s10, %s536_s23  ;;  %p541_p0 = scmp.lt.u32.totalorder %s777_s10, %s824_s3 }
 0x142   : > { %p542_p1 = scmp.lt.u32.totalorder %s540_s6, %s536_s23  ;;  %p544_p4 = scmp.lt.u32.totalorder %s536_s23, %s777_s10 }
 0x143   : > { %p538_p2 = pnand %p537_p9, %p712_p12 }
 0x144   : > { %p543_p11 = por %p542_p1, %p541_p0 }
 0x145   : > { %p539_p5 = pneg %p538_p2 }
 0x146   : > { %p545_p6 = por %p544_p4, %p543_p11 }
 0x148   : > { %p546_p8 = pnand %p545_p6, %p539_p5 }
 0x14a   : > { %549 = shalt.err (!%p546_p8)
}
 0x14b   : > { %407 = dma.vmem_to_hbm [thread:$0]  (%p712_p12), %s779_s5, 64, %s777_s10, %s279_s16  }
 0x14c PF: > { %s304_s20 = sand.u32 1, %s580_s12   ;;  %p839_p10 = scmp.ne.s32.totalorder %s829_s19, 0 }
 0x14d   : > { %p840_p13 = scmp.ge.s32.totalorder %s592_s15, 2  ;;  %s305_s4 = scalar_lea.sflag [#allocation4], %s304_s20 }
 0x14f   : > { %p418_p3 = pnand %p840_p13, %p839_p10 }
 0x151   : > { %575 = dma.done.wait (!%p418_p3), %s305_s4, 64  }
 0x152   : > { %577 = vsyncadd (!%p418_p3), %s305_s4, 4294967232  ;;  %p17_p7 = scmp.ge.s32.totalorder %s677_s24, 4   ;;  %s841_s12 = smov %s584_s13 }
 0x153   : > { %s842_s13 = smov %s588_s14  ;;  %s843_s14 = smov %s708_s17 }
 0x154   : > { %s844_s15 = smov %s677_s24  ;;  %19 = sbr.rel (!%p17_p7) target bundleno = 6 (0x6), region = 81 }
 0x15b   :  { %310 = vsyncpa [#allocation3], 1 }
 0x15c   :  { %312 = vsyncpa [#allocation3 + $0x1], 1 }
 0x15d   :  { %313 = vsyncpa [#allocation6], 1 }
 0x15e   :  { %314 = vsyncpa [#allocation4], 1 }
 0x15f   :  { %316 = vsyncpa [#allocation4 + $0x1], 1 }

</bundles_post_ra>
